<compile_context>
chip_gen: v5e
topology: v5e:2x2
jax: 0.10.0
libtpu: 0.0.40
codegen_flags: <defaults>
</compile_context>

<pallas_src>
import functools
import math

import jax
import jax.numpy as jnp
from jax.experimental import pallas as pl
from jax.experimental.pallas import tpu as pltpu


_LANE = 128                      # lane width: pad hidden dims to multiples of this
_ROW_ALIGN = 16                  # row-tile granularity (bf16 sublane pack = 16)
_ROW_TILE = 2048                 # default rows per grid step (review: 512 was ~50% overhead)
_VMEM_BUDGET = 40 * 1024 * 1024  # target working set (leaves headroom on v7x's 64 MiB)
_VMEM_LIMIT = 48 * 1024 * 1024   # explicit scoped-VMEM limit passed to Mosaic


def _round_up(x, m):
    return ((x + m - 1) // m) * m


def _fused_mlp_kernel(*refs, num_layers):
    """refs = (x_ref, w0_ref, b0_ref, w1_ref, b1_ref, ..., o_ref).

    x_ref: (TN, in_dim)   bf16 row tile of the input (feature dim unpadded)
    w_i:   (Ki, Mi)       bf16 resident weight (y = h @ w); hidden Mi 128-padded,
                          last Mi == out_dim (unpadded)
    b_i:   (1, Mi)        f32 resident bias
    o_ref: (TN, out_dim)  f32 row tile of the output
    All layers run back-to-back; intermediate activations never touch HBM.
    """
    x_ref = refs[0]
    o_ref = refs[-1]
    wb_refs = refs[1:-1]

    h = x_ref[...]                                   # bf16
    for i in range(num_layers):
        w = wb_refs[2 * i][...]                      # bf16
        b = wb_refs[2 * i + 1][...]                  # f32
        acc = jnp.dot(h, w, preferred_element_type=jnp.float32) + b   # f32 accum
        if i < num_layers - 1:
            acc = jnp.maximum(acc, 0.0)              # ReLU in f32 (safe on v5e)
            h = acc.astype(jnp.bfloat16)             # back to bf16 for next MXU pass
        else:
            o_ref[...] = acc.astype(o_ref.dtype)


class MLPParams:
    """nn.Linear stack from MLP.__init__, prepacked (bf16, padded) for the kernel."""

    def __init__(self, in_dim, out_dim, hidden_list, key, dtype=jnp.bfloat16):
        self.in_dim = in_dim
        self.out_dim = out_dim
        self.dtype = dtype
        self.layers = []   # unpadded f32 (w (K,M), b (M,), apply_relu) for reference
        self.packed = []   # packed      (w (Kp,Mp) dtype, b (1,Mp) f32) for the kernel

        dims = list(hidden_list) + [out_dim]
        lastv = in_dim          # true fan-in of this layer
        lastv_p = in_dim        # kernel-side (padded) fan-in of this layer
        for i, hidden in enumerate(dims):
            is_last = i == len(dims) - 1
            key, kw, kb = jax.random.split(key, 3)
            bound = 1.0 / math.sqrt(lastv)   # PyTorch nn.Linear default init
            # Stored as (in_features, out_features) == W^T so kernel does x @ W^T.
            w = jax.random.uniform(
                kw, (lastv, hidden), minval=-bound, maxval=bound, dtype=jnp.float32
            )
            b = jax.random.uniform(
                kb, (hidden,), minval=-bound, maxval=bound, dtype=jnp.float32
            )
            self.layers.append((w, b, not is_last))

            # Hidden outputs lane-dense (128-padded); final output kept at true
            # out_dim so the kernel never writes padded output bytes to HBM.
            # (Note: if hidden sizes are a free choice, multiples of 256 fill the
            #  v6e/v7x MXU tile natively.)
            mp = hidden if is_last else _round_up(hidden, _LANE)
            w_pad = (
                jnp.zeros((lastv_p, mp), dtype).at[:lastv, :hidden].set(w.astype(dtype))
            )
            b_pad = jnp.zeros((1, mp), jnp.float32).at[0, :hidden].set(b)
            self.packed.append((w_pad, b_pad))

            lastv = hidden
            lastv_p = mp

        self.max_width = max(w.shape[1] for w, _ in self.packed)


def _vmem_bytes(params: MLPParams, tn):
    """Rough VMEM working-set estimate for one grid step."""
    fixed = 0
    for w, b in params.packed:   # single-buffered residents (pl.Buffered(1))
        fixed += w.size * w.dtype.itemsize + b.size * b.dtype.itemsize
    x_bytes = 2 * tn * params.in_dim * jnp.dtype(params.dtype).itemsize  # double-buffered
    o_bytes = 2 * tn * params.out_dim * 4                                # double-buffered
    inter = 2 * tn * params.max_width * 4                                # f32 intermediates
    return fixed + x_bytes + o_bytes + inter


def _choose_row_tile(params: MLPParams, n, requested):
    """Largest row tile <= requested that (a) is a multiple of 16, (b) is not
    larger than needed for small N, and (c) keeps the VMEM working set under
    budget (shrink rather than overflow v7x's 64 MiB)."""
    tn = min(_round_up(requested, _ROW_ALIGN), _round_up(max(n, 1), _ROW_ALIGN))
    tn = max(tn, _ROW_ALIGN)
    while tn > _ROW_ALIGN and _vmem_bytes(params, tn) > _VMEM_BUDGET:
        tn = max(_ROW_ALIGN, _round_up(tn // 2, _ROW_ALIGN))
    return tn


def _fused_mlp_call(params: MLPParams, x2d, row_tile):
    """x2d: (N_pad, in_dim) in params.dtype with N_pad % row_tile == 0."""
    n_pad, in_dim = x2d.shape
    grid = (n_pad // row_tile,)

    args = [x2d]
    # x tile: feature dim is the full (unpadded) array dim -> legal block shape,
    # no wrapper-side feature pad needed.
    in_specs = [pl.BlockSpec((row_tile, in_dim), lambda i: (i, 0))]
    for w, b in params.packed:
        kp, mp = w.shape
        # Constant index_map => block resident across the whole grid; single
        # buffer (Buffered(1)) halves its VMEM footprint.
        in_specs.append(
            pl.BlockSpec((kp, mp), lambda i: (0, 0), pipeline_mode=pl.Buffered(1))
        )
        in_specs.append(
            pl.BlockSpec((1, mp), lambda i: (0, 0), pipeline_mode=pl.Buffered(1))
        )
        args.extend([w, b])

    m_out = params.packed[-1][0].shape[1]   # == out_dim (true width, no pad)
    out_specs = pl.BlockSpec((row_tile, m_out), lambda i: (i, 0))

    kernel = functools.partial(_fused_mlp_kernel, num_layers=len(params.packed))
    return pl.pallas_call(
        kernel,
        out_shape=jax.ShapeDtypeStruct((n_pad, m_out), jnp.float32),
        grid=grid,
        in_specs=in_specs,
        out_specs=out_specs,
        compiler_params=pltpu.CompilerParams(
            dimension_semantics=(pltpu.PARALLEL,),
            vmem_limit_bytes=_VMEM_LIMIT,
        ),
    )(*args)


def mlp_forward(params: MLPParams, x, row_tile=_ROW_TILE):
    """forward(): flatten leading dims, run the fused MLP kernel, restore shape."""
    lead_shape = x.shape[:-1]
    h = x.reshape(-1, x.shape[-1]).astype(params.dtype)   # bf16 storage for the kernel
    n = h.shape[0]

    tn = _choose_row_tile(params, n, row_tile)
    n_pad = _round_up(n, tn)
    if n_pad != n:                       # cheap row-only padding (no feature pad)
        h = jnp.pad(h, ((0, n_pad - n), (0, 0)))

    out = _fused_mlp_call(params, h, tn)          # (n_pad, out_dim) f32
    if n_pad != n:
        out = out[:n]
    return out.reshape(*lead_shape, params.out_dim)


def mlp_reference(params: MLPParams, x):
    """Pure-JAX f32 reference (unpadded weights) for correctness checking."""
    lead_shape = x.shape[:-1]
    h = x.reshape(-1, x.shape[-1]).astype(jnp.float32)
    for w, b, apply_relu in params.layers:
        h = h @ w + b
        if apply_relu:
            h = jnp.maximum(h, 0.0)
    return h.reshape(*lead_shape, -1)


if __name__ == "__main__":
    key = jax.random.PRNGKey(0)
    k_params, k_x = jax.random.split(key)

    in_dim, out_dim, hidden_list = 32, 16, [64, 64]
    params = MLPParams(in_dim, out_dim, hidden_list, k_params)

    # x: (batch=2, seq=8, in_dim=32) — MLP applies over the last dim.
    x = jax.random.normal(k_x, (2, 8, in_dim), dtype=jnp.float32)

    out = mlp_forward(params, x)
    out = jax.block_until_ready(out)

    ref = mlp_reference(params, x)
    assert out.shape == (2, 8, out_dim), out.shape
    # bf16 inputs/weights with f32 accumulation vs. pure-f32 reference:
    # loosened tolerance per the bf16 storage change.
    assert jnp.allclose(out, ref, atol=5e-2, rtol=5e-2), "mismatch vs reference"

    print("KERNEL_OK")
</pallas_src>

<mosaic_0001>
module attributes {stable_mosaic.version = 11 : i64} {
  func.func @_fused_mlp_kernel(%arg0: i32, %arg1: memref<16x32xbf16, #tpu.memory_space<vmem>>, %arg2: memref<32x128xbf16, #tpu.memory_space<vmem>>, %arg3: memref<1x128xf32, #tpu.memory_space<vmem>>, %arg4: memref<128x128xbf16, #tpu.memory_space<vmem>>, %arg5: memref<1x128xf32, #tpu.memory_space<vmem>>, %arg6: memref<128x16xbf16, #tpu.memory_space<vmem>>, %arg7: memref<1x16xf32, #tpu.memory_space<vmem>>, %arg8: memref<16x16xf32, #tpu.memory_space<vmem>>) attributes {dimension_semantics = [#tpu.dimension_semantics<parallel>], iteration_bounds = array<i64: 1>, scalar_prefetch = 0 : i64, scratch_operands = 0 : i64, tpu.core_type = #tpu.core_type<tc>, window_params = [{transform_indices = @transform_0, window_bounds = array<i64: 16, 32>}, {pipeline_mode = #tpu.pipeline_mode<synchronous>, transform_indices = @transform_1, window_bounds = array<i64: 32, 128>}, {pipeline_mode = #tpu.pipeline_mode<synchronous>, transform_indices = @transform_2, window_bounds = array<i64: 1, 128>}, {pipeline_mode = #tpu.pipeline_mode<synchronous>, transform_indices = @transform_3, window_bounds = array<i64: 128, 128>}, {pipeline_mode = #tpu.pipeline_mode<synchronous>, transform_indices = @transform_4, window_bounds = array<i64: 1, 128>}, {pipeline_mode = #tpu.pipeline_mode<synchronous>, transform_indices = @transform_5, window_bounds = array<i64: 128, 16>}, {pipeline_mode = #tpu.pipeline_mode<synchronous>, transform_indices = @transform_6, window_bounds = array<i64: 1, 16>}, {transform_indices = @transform_7, window_bounds = array<i64: 16, 16>}]} {
    %c0 = arith.constant 0 : index
    %c0_0 = arith.constant 0 : index
    %0 = vector.load %arg1[%c0, %c0_0] : memref<16x32xbf16, #tpu.memory_space<vmem>>, vector<16x32xbf16>
    %c0_1 = arith.constant 0 : index
    %c0_2 = arith.constant 0 : index
    %1 = vector.load %arg2[%c0_1, %c0_2] : memref<32x128xbf16, #tpu.memory_space<vmem>>, vector<32x128xbf16>
    %c0_3 = arith.constant 0 : index
    %c0_4 = arith.constant 0 : index
    %2 = vector.load %arg3[%c0_3, %c0_4] : memref<1x128xf32, #tpu.memory_space<vmem>>, vector<1x128xf32>
    %cst = arith.constant dense<0.000000e+00> : vector<16x128xf32>
    %3 = tpu.matmul %0, %1, %cst {dimension_numbers = #tpu.dot_dimension_numbers<[1], [0], [0], [1], [0, 0, 1, 1], [], []>} : vector<16x32xbf16>, vector<32x128xbf16>, vector<16x128xf32> -> vector<16x128xf32>
    %4 = vector.broadcast %2 : vector<1x128xf32> to vector<16x128xf32>
    %5 = arith.addf %3, %4 : vector<16x128xf32>
    %cst_5 = arith.constant 0.000000e+00 : f32
    %6 = vector.broadcast %cst_5 : f32 to vector<16x128xf32>
    %7 = arith.maximumf %5, %6 : vector<16x128xf32>
    %8 = arith.truncf %7 : vector<16x128xf32> to vector<16x128xbf16>
    %c0_6 = arith.constant 0 : index
    %c0_7 = arith.constant 0 : index
    %9 = vector.load %arg4[%c0_6, %c0_7] : memref<128x128xbf16, #tpu.memory_space<vmem>>, vector<128x128xbf16>
    %c0_8 = arith.constant 0 : index
    %c0_9 = arith.constant 0 : index
    %10 = vector.load %arg5[%c0_8, %c0_9] : memref<1x128xf32, #tpu.memory_space<vmem>>, vector<1x128xf32>
    %cst_10 = arith.constant dense<0.000000e+00> : vector<16x128xf32>
    %11 = tpu.matmul %8, %9, %cst_10 {dimension_numbers = #tpu.dot_dimension_numbers<[1], [0], [0], [1], [0, 0, 1, 1], [], []>} : vector<16x128xbf16>, vector<128x128xbf16>, vector<16x128xf32> -> vector<16x128xf32>
    %12 = vector.broadcast %10 : vector<1x128xf32> to vector<16x128xf32>
    %13 = arith.addf %11, %12 : vector<16x128xf32>
    %cst_11 = arith.constant 0.000000e+00 : f32
    %14 = vector.broadcast %cst_11 : f32 to vector<16x128xf32>
    %15 = arith.maximumf %13, %14 : vector<16x128xf32>
    %16 = arith.truncf %15 : vector<16x128xf32> to vector<16x128xbf16>
    %c0_12 = arith.constant 0 : index
    %c0_13 = arith.constant 0 : index
    %17 = vector.load %arg6[%c0_12, %c0_13] : memref<128x16xbf16, #tpu.memory_space<vmem>>, vector<128x16xbf16>
    %c0_14 = arith.constant 0 : index
    %c0_15 = arith.constant 0 : index
    %18 = vector.load %arg7[%c0_14, %c0_15] : memref<1x16xf32, #tpu.memory_space<vmem>>, vector<1x16xf32>
    %cst_16 = arith.constant dense<0.000000e+00> : vector<16x16xf32>
    %19 = tpu.matmul %16, %17, %cst_16 {dimension_numbers = #tpu.dot_dimension_numbers<[1], [0], [0], [1], [0, 0, 1, 1], [], []>} : vector<16x128xbf16>, vector<128x16xbf16>, vector<16x16xf32> -> vector<16x16xf32>
    %20 = vector.broadcast %18 : vector<1x16xf32> to vector<16x16xf32>
    %21 = arith.addf %19, %20 : vector<16x16xf32>
    %c0_17 = arith.constant 0 : index
    %c0_18 = arith.constant 0 : index
    %22 = vector.load %arg8[%c0_17, %c0_18] : memref<16x16xf32, #tpu.memory_space<vmem>>, vector<16x16xf32>
    tpu.vector_store %arg8[%c0_17, %c0_18], %21 {strides = array<i32>} : memref<16x16xf32, #tpu.memory_space<vmem>>, vector<16x16xf32>,
    return
  }
  func.func @transform_0(%arg0: i32) -> (i32, i32) {
    %c0_i32 = arith.constant 0 : i32
    %c0_i32_0 = arith.constant 0 : i32
    return %arg0, %c0_i32 : i32, i32
  }
  func.func @transform_1(%arg0: i32) -> (i32, i32) {
    %c0_i32 = arith.constant 0 : i32
    %c0_i32_0 = arith.constant 0 : i32
    %c0_i32_1 = arith.constant 0 : i32
    return %c0_i32, %c0_i32_0 : i32, i32
  }
  func.func @transform_2(%arg0: i32) -> (i32, i32) {
    %c0_i32 = arith.constant 0 : i32
    %c0_i32_0 = arith.constant 0 : i32
    %c0_i32_1 = arith.constant 0 : i32
    return %c0_i32, %c0_i32_0 : i32, i32
  }
  func.func @transform_3(%arg0: i32) -> (i32, i32) {
    %c0_i32 = arith.constant 0 : i32
    %c0_i32_0 = arith.constant 0 : i32
    %c0_i32_1 = arith.constant 0 : i32
    return %c0_i32, %c0_i32_0 : i32, i32
  }
  func.func @transform_4(%arg0: i32) -> (i32, i32) {
    %c0_i32 = arith.constant 0 : i32
    %c0_i32_0 = arith.constant 0 : i32
    %c0_i32_1 = arith.constant 0 : i32
    return %c0_i32, %c0_i32_0 : i32, i32
  }
  func.func @transform_5(%arg0: i32) -> (i32, i32) {
    %c0_i32 = arith.constant 0 : i32
    %c0_i32_0 = arith.constant 0 : i32
    %c0_i32_1 = arith.constant 0 : i32
    return %c0_i32, %c0_i32_0 : i32, i32
  }
  func.func @transform_6(%arg0: i32) -> (i32, i32) {
    %c0_i32 = arith.constant 0 : i32
    %c0_i32_0 = arith.constant 0 : i32
    %c0_i32_1 = arith.constant 0 : i32
    return %c0_i32, %c0_i32_0 : i32, i32
  }
  func.func @transform_7(%arg0: i32) -> (i32, i32) {
    %c0_i32 = arith.constant 0 : i32
    %c0_i32_0 = arith.constant 0 : i32
    return %arg0, %c0_i32 : i32, i32
  }
}

</mosaic_0001>

<bundles_post_ra>
// kernel: tpu_custom_call.1
= control target key start
LH: loop header
LB: loop body
LE: loop exit
PB: predicated region body
PF: predicated region fallthrough
CT: control target
= control target key end

     0   :  { %12 = vsyncpa [#allocation3], 0  ;;  %s550_s0 = inlined_call_operand.vmem [shape: bf16[16,32], index: 0, kind: input, shape index: {}]   ;;  %s551_s1 = inlined_call_operand.hbm [shape: bf16[32,128], index: 1, kind: input, shape index: {}]   ;;  %s552_s2 = inlined_call_operand.vmem [shape: f32[1,128], index: 2, kind: input, shape index: {}]   ;;  %s553_s3 = inlined_call_operand.vmem [shape: bf16[128,128], index: 3, kind: input, shape index: {}]   ;;  %s554_s4 = inlined_call_operand.vmem [shape: f32[1,128], index: 4, kind: input, shape index: {}]   ;;  %s555_s5 = inlined_call_operand.vmem [shape: bf16[128,16], index: 5, kind: input, shape index: {}]   ;;  %s556_s6 = inlined_call_operand.vmem [shape: f32[1,16], index: 6, kind: input, shape index: {}]   ;;  %s557_s7 = inlined_call_operand.hbm [shape: f32[16,16], index: 7, kind: output, shape index: {}]  }
   0x1   :  { %13 = vsyncpa [#allocation4], 0  ;;  %s20_s26 = sshll.u32 %s551_s1, 4  ;;  %s438_s27 = smov [#allocation2]   ;;  %s21_s26 = int_to_ptr.hbm [resolvable:$true] %s20_s26 }
   0x2   :  { %s22_s28 = sshll.u32 %s438_s27, 4  ;;  %s439_s29 = smov 64   ;;  %s23_s28 = int_to_ptr.vmem [resolvable:$true] %s22_s28 }
   0x3   :  { %s440_s30 = smov 4  }
   0x4   :  { %28 = dma.hbm_to_vmem [thread:$0]  %s21_s26, 256, %s23_s28, [#allocation3], %s439_s29, %s439_s29, %s440_s30  }
   0x5   :  { %434 = dma.done.wait [#allocation3], 256  }
   0x6   :  { %435 = vsyncadd [#allocation3], 4294967040  ;;  %v360_v0 = vld [vmem:[#allocation2 + $0x8] sm:$0xff]  ;;  %v368_v1 = vld [vmem:[%s553_s3 + $0x38] sm:$0xff]  ;;  %vm71_vm0 = vcmask 261120   ;;  %vm259_vm1 = vcmask 130048  }
   0x7   :  { %81 = vmatpush.bf16.msra.mxu0 %v360_v0  ;;  %v359_v2 = vld [vmem:[#allocation2] sm:$0xff]  ;;  %160 = vmatpush.bf16.msra.mxu1 %v368_v1  ;;  %v367_v3 = vld [vmem:[%s553_s3 + $0x30] sm:$0xff]  ;;  %v366_v5 = vld [vmem:[%s553_s3 + $0x28] sm:$0xff]  ;;  %s442_s22 = smov 128   ;;  %s443_s23 = smov 8  }
   0x8   :  { %v358_v4 = vld [vmem:[%s550_s0] sm:$0xff]  ;;  %v364_v7 = vld [vmem:[%s553_s3 + $0x18] sm:$0xff]  ;;  %v363_v8 = vld [vmem:[%s553_s3 + $0x10] sm:$0xff] }
   0x9   :  { %v365_v6 = vld [vmem:[%s553_s3 + $0x20] sm:$0xff]  ;;  %v362_v9 = vld [vmem:[%s553_s3 + $0x8] sm:$0xff]  ;;  %v376_v11 = vld [vmem:[%s555_s5 + $0x38] sm:$0xff] }
   0xa   :  { %v361_v10 = vld [vmem:[%s553_s3] sm:$0xff]  ;;  %245 = vmatpush.bf16.msra.mxu2 %v376_v11  ;;  %v375_v12 = vld [vmem:[%s555_s5 + $0x30] sm:$0xff]  ;;  %v374_v13 = vld [vmem:[%s555_s5 + $0x28] sm:$0xff] }
   0xb   :  { %82 = vmatpush.bf16.msra.mxu0 %v359_v2  ;;  %161 = vmatpush.bf16.msra.mxu1 %v367_v3  ;;  %v373_v14 = vld [vmem:[%s555_s5 + $0x20] sm:$0xff]  ;;  %v372_v23 = vld [vmem:[%s555_s5 + $0x18] sm:$0xff]  ;;  %v371_v24 = vld [vmem:[%s555_s5 + $0x10] sm:$0xff] }
   0xc   :  { %v383_v16 = vld [vmem:[%s552_s2] ss:$0 sm:$0xff]  ;;  %v370_v25 = vld [vmem:[%s555_s5 + $0x8] sm:$0xff] }
   0xd   :  { %v369_v26 = vld [vmem:[%s555_s5] sm:$0xff]  ;;  %s441_s5 = smov [#allocation5]  }
   0xe   :  { %293 = vmatmul.msk.bf16.vlgmr.msra.gmra.mxu0 %vm71_vm0, %v358_v4  ;;  %246 = vmatpush.bf16.msra.mxu2 %v375_v12  ;;  %v384_v28 = vld [vmem:[%s554_s4] ss:$0 sm:$0xff]  ;;  %s266_s19 = sshll.u32 %s441_s5, 4  ;;  %s268_s4 = sshll.u32 %s557_s7, 4  ;;  %s267_s19 = int_to_ptr.vmem [resolvable:$true] %s266_s19  ;;  %s269_s4 = int_to_ptr.hbm [resolvable:$true] %s268_s4 }
   0xf   :  { %162 = vmatpush.bf16.msra.mxu1 %v366_v5  ;;  %v385_v35 = vld [vmem:[%s556_s6] ss:$0 sm:$0xff] }
  0x12   :  { %247 = vmatpush.bf16.msra.mxu2 %v374_v13 }
  0x13   :  { %163 = vmatpush.bf16.msra.mxu1 %v365_v6 }
  0x16   :  { %248 = vmatpush.bf16.msra.mxu2 %v373_v14 }
  0x17   :  { %164 = vmatpush.bf16.msra.mxu1 %v364_v7 }
  0x1a   :  { %249 = vmatpush.bf16.msra.mxu2 %v372_v23 }
  0x1b   :  { %165 = vmatpush.bf16.msra.mxu1 %v363_v8 }
  0x1e   :  { %250 = vmatpush.bf16.msra.mxu2 %v371_v24 }
  0x1f   :  { %166 = vmatpush.bf16.msra.mxu1 %v362_v9 }
  0x22   :  { %251 = vmatpush.bf16.msra.mxu2 %v370_v25 }
  0x23   :  { %167 = vmatpush.bf16.msra.mxu1 %v361_v10 }
  0x26   :  { %252 = vmatpush.bf16.msra.mxu2 %v369_v26 }
  0x8b   :  { %v84_v15 = vpop.f32.mrf.mxu0 }
  0x8c   :  { %v85_v17 = vadd.f32 %v383_v16, %v84_v15 }
  0x8e   :  { %v89_v20 = vmax.f32 %v85_v17, 0.0 }
  0x93   :  { %v86_v18 = vpop.f32.mrf.mxu0 }
  0x94   :  { %v87_v19 = vadd.f32 %v383_v16, %v86_v18 }
  0x96   :  { %v90_v21 = vmax.f32 %v87_v19, 0.0 }
  0x98   :  { %v91_v22 = vpack.c.bf16 %v90_v21, %v89_v20 }
  0x9a   :  { %168 = vmatmul.bf16.vlgmr.msra.gmra.mxu1 %v91_v22 }
 0x117   :  { %v169_v27 = vpop.f32.mrf.mxu1 }
 0x118   :  { %v170_v29 = vadd.f32 %v384_v28, %v169_v27 }
 0x11a   :  { %v174_v32 = vmax.f32 %v170_v29, 0.0 }
 0x11f   :  { %v171_v30 = vpop.f32.mrf.mxu1 }
 0x120   :  { %v172_v31 = vadd.f32 %v384_v28, %v171_v30 }
 0x122   :  { %v175_v33 = vmax.f32 %v172_v31, 0.0 }
 0x124   :  { %v176_v34 = vpack.c.bf16 %v175_v33, %v174_v32 }
 0x126   :  { %253 = vmatmul.bf16.vlgmr.msra.gmra.mxu2 %v176_v34 }
 0x1a9   :  { %v254_v36 = vpop.f32.mrf.mxu2 }
 0x1aa   :  { %v255_v37 = vadd.f32 %v385_v35, %v254_v36 }
 0x1ac   :  { %260 = vst.msk [vmem:[#allocation5] sm:$0xff] %vm259_vm1, %v255_v37 }
 0x1b1   :  { %v256_v38 = vpop.f32.mrf.mxu2 }
 0x1b2   :  { %v257_v39 = vadd.f32 %v385_v35, %v256_v38 }
 0x1b4   :  { %261 = vst.msk [vmem:[#allocation5 + $0x8] sm:$0xff] %vm259_vm1, %v257_v39 }
 0x1b5   :  { %274 = dma.vmem_to_hbm [thread:$0]  %s267_s19, 256, %s269_s4, [#allocation4], %s442_s22, %s442_s22, %s443_s23  }
 0x1b6   :  { %436 = dma.done.wait [#allocation4], 256  }
 0x1b7   :  { %437 = vsyncadd [#allocation4], 4294967040 }
 0x1b8   :  { %279 = vsyncpa [#allocation3], 1 }
 0x1b9   :  { %280 = vsyncpa [#allocation4], 1 }

</bundles_post_ra>
